<compile_context>
chip_gen: v7x
topology: tpu7x:2x2x1
jax: 0.10.0
libtpu: 0.0.40
codegen_flags: <defaults>
</compile_context>

<pallas_src>
import jax
import jax.numpy as jnp
from jax.experimental import pallas as pl
from jax.experimental.pallas import tpu as pltpu

_LANES = 128
# ~4 MiB per block: 4x (double-buffered in + out) = 16 MiB, which fits under
# v5e's 16 MiB default scoped VMEM only if raised, so we explicitly set a
# 32 MiB vmem limit (safe on v5e/v6e: 128 MiB physical; v7x: 64 MiB physical).
_TARGET_BLOCK_BYTES = 4 * 1024 * 1024
_VMEM_LIMIT_BYTES = 32 * 1024 * 1024


def _relu_kernel(x_ref, o_ref):
    # Whole tile resident in VMEM; pure VPU elementwise max with 0.
    o_ref[...] = jnp.maximum(x_ref[...], jnp.zeros((), dtype=x_ref.dtype))


def _relu_2d(slab: jax.Array, tm: int) -> jax.Array:
    """Run the ReLU kernel over a lane-dense (rows, 128) slab."""
    rows, lanes = slab.shape
    grid = (pl.cdiv(rows, tm),)  # partial last block is masked by Pallas
    return pl.pallas_call(
        _relu_kernel,
        out_shape=jax.ShapeDtypeStruct((rows, lanes), slab.dtype),
        grid_spec=pltpu.PrefetchScalarGridSpec(
            num_scalar_prefetch=0,
            grid=grid,
            in_specs=[pl.BlockSpec((tm, lanes), lambda i: (i, 0))],
            out_specs=pl.BlockSpec((tm, lanes), lambda i: (i, 0)),
        ),
        compiler_params=pltpu.CompilerParams(
            dimension_semantics=("parallel",),
            vmem_limit_bytes=_VMEM_LIMIT_BYTES,
        ),
    )(slab)


@jax.jit
def relu_pallas(x: jax.Array) -> jax.Array:
    """ReLU over an arbitrary-shaped array via a lane-dense 2D Pallas kernel."""
    orig_shape = x.shape
    dtype = x.dtype
    itemsize = jnp.dtype(dtype).itemsize
    total = x.size

    # dtype-aware sublane packing: 8 for 32-bit, 16 for bf16/f16, 32 for int8/fp8
    sublane = max(8, 32 // itemsize)

    # Block rows targeting ~4 MiB per block, rounded to the sublane multiple.
    tm = _TARGET_BLOCK_BYTES // (_LANES * itemsize)
    tm = max(sublane, (tm // sublane) * sublane)

    if total % _LANES == 0:
        # Fast path: contiguous reshape (bitcast) — no extra HBM passes.
        rows = total // _LANES
        rows_rounded = ((rows + sublane - 1) // sublane) * sublane
        tm_eff = min(tm, rows_rounded)
        out = _relu_2d(x.reshape(rows, _LANES), tm_eff)
        return out.reshape(orig_shape)

    # Rare fallback: total not divisible by 128 — pad only up to 127 elements.
    padded = ((total + _LANES - 1) // _LANES) * _LANES
    flat = jnp.ravel(x)
    flat = jnp.concatenate([flat, jnp.zeros((padded - total,), dtype=dtype)])
    rows = padded // _LANES
    rows_rounded = ((rows + sublane - 1) // sublane) * sublane
    tm_eff = min(tm, rows_rounded)
    out = _relu_2d(flat.reshape(rows, _LANES), tm_eff)
    return out.reshape(-1)[:total].reshape(orig_shape)


class MPallas:
    """JAX/Pallas equivalent of the PyTorch module M (a single ReLU)."""

    def __init__(self):
        pass  # ReLU has no parameters.

    def __call__(self, x208):
        # Note: PyTorch's ReLU(inplace=True) mutates its input; JAX is
        # functional so we return a new array with identical values.
        x209 = relu_pallas(x208)
        return x209


if __name__ == "__main__":
    # Small NCHW input consistent with the module's forward (original was
    # [1, 192, 14, 14]); using a reduced size per instructions.
    key = jax.random.PRNGKey(0)
    x = jax.random.normal(key, (2, 4, 16, 16), dtype=jnp.float32)

    model = MPallas()
    y = model(x)
    y = jax.block_until_ready(y)

    # Sanity check against plain JAX ReLU.
    expected = jnp.maximum(x, 0.0)
    assert y.shape == x.shape and y.dtype == x.dtype
    assert bool(jnp.all(y == expected))

    print("KERNEL_OK")
</pallas_src>

<mosaic_0001>
module attributes {stable_mosaic.version = 11 : i64} {
  func.func @_relu_kernel(%arg0: i32, %arg1: memref<16x128xf32, #tpu.memory_space<vmem>>, %arg2: memref<16x128xf32, #tpu.memory_space<vmem>>) attributes {dimension_semantics = [#tpu.dimension_semantics<parallel>], iteration_bounds = array<i64: 1>, scalar_prefetch = 0 : i64, scratch_operands = 0 : i64, tpu.core_type = #tpu.core_type<tc>, window_params = [{transform_indices = @transform_0, window_bounds = array<i64: 16, 128>}, {transform_indices = @transform_1, window_bounds = array<i64: 16, 128>}]} {
    %c0 = arith.constant 0 : index
    %c0_0 = arith.constant 0 : index
    %0 = vector.load %arg1[%c0, %c0_0] : memref<16x128xf32, #tpu.memory_space<vmem>>, vector<16x128xf32>
    %cst = arith.constant 0.000000e+00 : f32
    %1 = vector.broadcast %cst : f32 to vector<16x128xf32>
    %2 = arith.maximumf %0, %1 : vector<16x128xf32>
    %c0_1 = arith.constant 0 : index
    %c0_2 = arith.constant 0 : index
    %3 = vector.load %arg2[%c0_1, %c0_2] : memref<16x128xf32, #tpu.memory_space<vmem>>, vector<16x128xf32>
    tpu.vector_store %arg2[%c0_1, %c0_2], %2 {strides = array<i32>} : memref<16x128xf32, #tpu.memory_space<vmem>>, vector<16x128xf32>,
    return
  }
  func.func @transform_0(%arg0: i32) -> (i32, i32) {
    %c0_i32 = arith.constant 0 : i32
    %c0_i32_0 = arith.constant 0 : i32
    return %arg0, %c0_i32 : i32, i32
  }
  func.func @transform_1(%arg0: i32) -> (i32, i32) {
    %c0_i32 = arith.constant 0 : i32
    %c0_i32_0 = arith.constant 0 : i32
    return %arg0, %c0_i32 : i32, i32
  }
}

</mosaic_0001>

<bundles_post_ra>
// kernel: relu_pallas.1
= control target key start
LH: loop header
LB: loop body
LE: loop exit
PB: predicated region body
PF: predicated region fallthrough
CT: control target
= control target key end

     0   :  { %s40_s0 = inlined_call_operand.vmem [shape: f32[16,128], index: 0, kind: input, shape index: {}]   ;;  %s41_s1 = inlined_call_operand.vmem [shape: f32[16,128], index: 1, kind: output, shape index: {}]  }
   0x1   :  { %v8_v0 = vld [vmem:[%s40_s0] sm:$0xff]  ;;  %v9_v1 = vld [vmem:[%s40_s0 + $0x8] sm:$0xff] }
   0x2   :  { %v10_v2 = vmax.f32 %v8_v0, 0.0  ;;  %v11_v3 = vmax.f32 %v9_v1, 0.0 }
   0x4   :  { %12 = vst [vmem:[%s41_s1] sm:$0xff] %v10_v2  ;;  %13 = vst [vmem:[%s41_s1 + $0x8] sm:$0xff] %v11_v3 }

</bundles_post_ra>
